<compile_context>
chip_gen: v6e
topology: v6e:2x2x1
jax: 0.10.0
libtpu: 0.0.40
codegen_flags: <defaults>
</compile_context>

<pallas_src>
import functools

import jax
import jax.numpy as jnp
from jax.experimental import pallas as pl
from jax.experimental.pallas import tpu as pltpu

_SUBLANE = 8
_TM_CANDIDATES = (1024, 768, 512, 384, 256, 128, 64, 32, 16, 8)
_TH_CANDIDATES = (2048, 1536, 1024, 768, 512, 384, 256, 128)
_INV_SQRT2 = 0.7071067811865476


# --------------------------------------------------------------------------- #
# kernels
# --------------------------------------------------------------------------- #
def _gelu_f32(h, approximate):
    if approximate:
        # tanh-form GELU: transcendental lands on the EUP slot instead of the
        # ~20-op erf polynomial on the (often saturated) VALU slot.
        return jax.nn.gelu(h, approximate=True)
    # exact erf form — matches torch.nn.GELU() default
    return 0.5 * h * (1.0 + jax.lax.erf(h * jnp.float32(_INV_SQRT2)))


def _mlp_kernel_resident(x_ref, w1_ref, b1_ref, w2_ref, b2_ref, o_ref, *,
                         precision, approximate_gelu):
    # Full weights resident in VMEM; one row tile per grid step, no scratch.
    h = jnp.dot(x_ref[...], w1_ref[...],
                preferred_element_type=jnp.float32, precision=precision)
    h = _gelu_f32(h + b1_ref[...].astype(jnp.float32), approximate_gelu)
    y = jnp.dot(h.astype(w2_ref.dtype), w2_ref[...],
                preferred_element_type=jnp.float32, precision=precision)
    o_ref[...] = (y + b2_ref[...].astype(jnp.float32)).astype(o_ref.dtype)


def _mlp_kernel_tiled(x_ref, w1_ref, b1_ref, w2_ref, b2_ref, o_ref, acc_ref, *,
                      precision, approximate_gelu):
    # H tiled along grid axis k (innermost, "arbitrary"); f32 accumulation.
    k = pl.program_id(1)

    @pl.when(k == 0)
    def _():
        # Seed the accumulator with b2 -> projection bias added exactly once.
        acc_ref[...] = jnp.broadcast_to(
            b2_ref[...].astype(jnp.float32), acc_ref.shape)

    h = jnp.dot(x_ref[...], w1_ref[...],
                preferred_element_type=jnp.float32, precision=precision)
    h = _gelu_f32(h + b1_ref[...].astype(jnp.float32), approximate_gelu)
    acc_ref[...] += jnp.dot(h.astype(w2_ref.dtype), w2_ref[...],
                            preferred_element_type=jnp.float32,
                            precision=precision)

    @pl.when(k == pl.num_programs(1) - 1)
    def _():
        o_ref[...] = acc_ref[...].astype(o_ref.dtype)


# --------------------------------------------------------------------------- #
# planning helpers
# --------------------------------------------------------------------------- #
def _round_up(x, m):
    return ((x + m - 1) // m) * m


def _vmem_capacity_bytes():
    """Per-TensorCore VMEM capacity; conservative fallback if undetectable."""
    try:
        cap = int(pltpu.get_tpu_info().vmem_capacity_bytes)
        if cap > 0:
            return cap
    except Exception:
        pass
    try:
        kind = jax.devices()[0].device_kind.lower()
    except Exception:
        kind = ""
    if "v7" in kind or "7x" in kind:
        return 64 * 1024 * 1024
    if "v5" in kind or "v6" in kind:
        return 128 * 1024 * 1024
    return 64 * 1024 * 1024          # unknown: assume the smallest (v7x-like)


def _plan_tiles(M, C, H, itemsize, budget):
    """Pick (tm, th, resident) so the estimated VMEM footprint fits ~85% of
    `budget`.  Estimates include double-buffered inputs/outputs, the f32
    accumulator (streamed plan) and the (tm, th) f32 GELU temp + its cast."""
    usable = (budget * 85) // 100      # headroom for Mosaic internal scratch

    def resident_bytes(tm):
        return (2 * (tm * C + C * H + H + H * C + C) * itemsize   # dbl-buffered ins
                + 2 * tm * C * itemsize                           # dbl-buffered out
                + tm * H * (4 + itemsize))                        # gelu temp + cast

    def tiled_bytes(tm, th):
        return (2 * (tm * C + C * th + th + th * C + C) * itemsize
                + 2 * tm * C * itemsize
                + tm * C * 4                                      # f32 accumulator
                + tm * th * (4 + itemsize))                       # gelu temp + cast

    # ---- weight-resident plan: W1/W2 DMA'd exactly once per call ----------
    if M <= _SUBLANE:
        res_cands = [M]
    else:
        # cap the row tile so there are >=2 row tiles (pipelining + v7x's 2 TCs)
        tm_cap = _round_up(pl.cdiv(M, 2), _SUBLANE)
        res_cands = [t for t in _TM_CANDIDATES if t <= tm_cap] or [_SUBLANE]
    for tm in res_cands:
        if resident_bytes(tm) <= usable:
            return tm, H, True

    # ---- streamed plan: weights re-streamed once per row tile -------------
    th_cands = [t for t in _TH_CANDIDATES if H % t == 0]
    if not th_cands:
        th_cands = [H]   # awkward H: single H tile (correctness over perf)
        # TODO(synk): pad H to a lane multiple instead for awkward hidden sizes.
    tm_cands = ([M] if M <= _TM_CANDIDATES[0] else []) + \
               [t for t in _TM_CANDIDATES if t < M]
    for tm in tm_cands:          # biggest row tile first: intensity ~ tm F/B
        for th in th_cands:      # then biggest H tile that fits
            if tiled_bytes(tm, th) <= usable:
                return tm, th, False
    return tm_cands[-1], th_cands[-1], False   # degenerate last resort


# --------------------------------------------------------------------------- #
# wrapper
# --------------------------------------------------------------------------- #
def mlp_pallas(x, w1, b1, w2, b2, *, approximate_gelu=False, _force_plan=None):
    """x: (B, T, C). w1: (C, 4C), b1: (4C,), w2: (4C, C), b2: (C,)."""
    B, T, C = x.shape
    H = w1.shape[1]
    assert w1.shape == (C, H) and b1.shape == (H,)
    assert w2.shape == (H, C) and b2.shape == (C,)
    M = B * T
    itemsize = jnp.dtype(x.dtype).itemsize

    cap = _vmem_capacity_bytes()
    budget = (cap * 25) // 32          # ~50 MiB on v7x (64), ~100 MiB on v5e/v6e

    if _force_plan is not None:
        tm, th, resident = _force_plan
    else:
        tm, th, resident = _plan_tiles(M, C, H, itemsize, budget)

    # f32 operands -> explicit fp32 MXU contraction; bf16 stays native
    # (f32 accumulation via preferred_element_type in both cases).
    precision = (jax.lax.Precision.HIGHEST
                 if jnp.dtype(x.dtype) == jnp.float32
                 else jax.lax.Precision.DEFAULT)

    x2d = x.reshape(M, C)              # no jnp.pad: boundary blocks are partial
    b1r = b1.reshape(1, H)
    b2r = b2.reshape(1, C)
    n_rows = pl.cdiv(M, tm)

    if resident:
        grid = (n_rows,)
        kernel = functools.partial(_mlp_kernel_resident, precision=precision,
                                   approximate_gelu=approximate_gelu)
        in_specs = [
            pl.BlockSpec((tm, C), lambda i: (i, 0)),   # X row tile
            pl.BlockSpec((C, H), lambda i: (0, 0)),    # W1 (resident)
            pl.BlockSpec((1, H), lambda i: (0, 0)),    # b1 (resident)
            pl.BlockSpec((H, C), lambda i: (0, 0)),    # W2 (resident)
            pl.BlockSpec((1, C), lambda i: (0, 0)),    # b2 (resident)
        ]
        out_specs = pl.BlockSpec((tm, C), lambda i: (i, 0))
        scratch_shapes = []
        dims = ("parallel",)
    else:
        grid = (n_rows, H // th)
        kernel = functools.partial(_mlp_kernel_tiled, precision=precision,
                                   approximate_gelu=approximate_gelu)
        in_specs = [
            pl.BlockSpec((tm, C), lambda i, k: (i, 0)),   # X row tile (held over k)
            pl.BlockSpec((C, th), lambda i, k: (0, k)),   # W1 H-tile
            pl.BlockSpec((1, th), lambda i, k: (0, k)),   # b1 H-tile
            pl.BlockSpec((th, C), lambda i, k: (k, 0)),   # W2 H-tile
            pl.BlockSpec((1, C), lambda i, k: (0, 0)),    # b2
        ]
        out_specs = pl.BlockSpec((tm, C), lambda i, k: (i, 0))
        scratch_shapes = [pltpu.VMEM((tm, C), jnp.float32)]
        dims = ("parallel", "arbitrary")

    out = pl.pallas_call(
        kernel,
        out_shape=jax.ShapeDtypeStruct((M, C), x.dtype),
        grid_spec=pltpu.PrefetchScalarGridSpec(
            num_scalar_prefetch=0,
            grid=grid,
            in_specs=in_specs,
            out_specs=out_specs,
            scratch_shapes=scratch_shapes,
        ),
        compiler_params=pltpu.CompilerParams(
            dimension_semantics=dims,
            vmem_limit_bytes=int(budget),
        ),
    )(x2d, w1, b1r, w2, b2r)

    return out.reshape(B, T, C)


# --------------------------------------------------------------------------- #
# reference + test
# --------------------------------------------------------------------------- #
def _mlp_reference(x, w1, b1, w2, b2):
    x = x.astype(jnp.float32)
    h = jnp.dot(x, w1.astype(jnp.float32)) + b1.astype(jnp.float32)
    h = 0.5 * h * (1.0 + jax.lax.erf(h / jnp.sqrt(2.0)))
    return jnp.dot(h, w2.astype(jnp.float32)) + b2.astype(jnp.float32)


def _make_inputs(key, B, T, C, H, dtype=jnp.float32):
    kx, kw1, kb1, kw2, kb2 = jax.random.split(key, 5)
    x = jax.random.normal(kx, (B, T, C), dtype=jnp.float32)
    w1 = jax.random.normal(kw1, (C, H), dtype=jnp.float32) * 0.02
    b1 = jax.random.normal(kb1, (H,), dtype=jnp.float32) * 0.02
    w2 = jax.random.normal(kw2, (H, C), dtype=jnp.float32) * 0.02
    b2 = jax.random.normal(kb2, (C,), dtype=jnp.float32) * 0.02
    cast = lambda a: a.astype(dtype)
    return tuple(map(cast, (x, w1, b1, w2, b2)))


if __name__ == "__main__":
    key = jax.random.PRNGKey(0)
    k1, k2 = jax.random.split(key, 2)

    # --- config 1: small GPT-style MLP (exercises the weight-resident path) ---
    B, T, C = 2, 8, 32
    H = 4 * C
    x, w1, b1, w2, b2 = _make_inputs(k1, B, T, C, H, jnp.float32)
    y_ref = _mlp_reference(x, w1, b1, w2, b2)

    y = jax.block_until_ready(mlp_pallas(x, w1, b1, w2, b2))
    assert jnp.allclose(y, y_ref, atol=1e-5, rtol=1e-5), "f32 mismatch vs reference"

    xb, w1b, b1b, w2b, b2b = (a.astype(jnp.bfloat16) for a in (x, w1, b1, w2, b2))
    y_bf = jax.block_until_ready(mlp_pallas(xb, w1b, b1b, w2b, b2b))
    assert jnp.allclose(y_bf.astype(jnp.float32), y_ref, atol=5e-2, rtol=5e-2), \
        "bf16 mismatch vs reference"

    # --- config 2: force the streamed (H-tiled) plan with real accumulation ---
    B2, T2, C2 = 2, 16, 64
    H2 = 4 * C2
    x2, w12, b12, w22, b22 = _make_inputs(k2, B2, T2, C2, H2, jnp.float32)
    y2_ref = _mlp_reference(x2, w12, b12, w22, b22)
    y2 = jax.block_until_ready(
        mlp_pallas(x2, w12, b12, w22, b22, _force_plan=(16, 128, False)))
    assert jnp.allclose(y2, y2_ref, atol=2e-3, rtol=2e-3), \
        "streamed-path mismatch vs reference"

    print("KERNEL_OK")
</pallas_src>

<mosaic_0001>
module attributes {stable_mosaic.version = 11 : i64} {
  func.func @_mlp_kernel_resident(%arg0: i32, %arg1: memref<8x32xf32, #tpu.memory_space<vmem>>, %arg2: memref<32x128xf32, #tpu.memory_space<vmem>>, %arg3: memref<1x128xf32, #tpu.memory_space<vmem>>, %arg4: memref<128x32xf32, #tpu.memory_space<vmem>>, %arg5: memref<1x32xf32, #tpu.memory_space<vmem>>, %arg6: memref<8x32xf32, #tpu.memory_space<vmem>>) attributes {dimension_semantics = [#tpu.dimension_semantics<parallel>], iteration_bounds = array<i64: 2>, scalar_prefetch = 0 : i64, scratch_operands = 0 : i64, tpu.core_type = #tpu.core_type<tc>, window_params = [{transform_indices = @transform_0, window_bounds = array<i64: 8, 32>}, {pipeline_mode = #tpu.pipeline_mode<synchronous>, transform_indices = @transform_1, window_bounds = array<i64: 32, 128>}, {pipeline_mode = #tpu.pipeline_mode<synchronous>, transform_indices = @transform_2, window_bounds = array<i64: 1, 128>}, {pipeline_mode = #tpu.pipeline_mode<synchronous>, transform_indices = @transform_3, window_bounds = array<i64: 128, 32>}, {pipeline_mode = #tpu.pipeline_mode<synchronous>, transform_indices = @transform_4, window_bounds = array<i64: 1, 32>}, {transform_indices = @transform_5, window_bounds = array<i64: 8, 32>}]} {
    %c0 = arith.constant 0 : index
    %c0_0 = arith.constant 0 : index
    %0 = vector.load %arg1[%c0, %c0_0] : memref<8x32xf32, #tpu.memory_space<vmem>>, vector<8x32xf32>
    %c0_1 = arith.constant 0 : index
    %c0_2 = arith.constant 0 : index
    %1 = vector.load %arg2[%c0_1, %c0_2] : memref<32x128xf32, #tpu.memory_space<vmem>>, vector<32x128xf32>
    %cst = arith.constant dense<0.000000e+00> : vector<8x128xf32>
    %2 = tpu.matmul %0, %1, %cst {dimension_numbers = #tpu.dot_dimension_numbers<[1], [0], [0], [1], [0, 0, 1, 1], [], []>, precision = #tpu.contract_precision<fp32>} : vector<8x32xf32>, vector<32x128xf32>, vector<8x128xf32> -> vector<8x128xf32>
    %c0_3 = arith.constant 0 : index
    %c0_4 = arith.constant 0 : index
    %3 = vector.load %arg3[%c0_3, %c0_4] : memref<1x128xf32, #tpu.memory_space<vmem>>, vector<1x128xf32>
    %4 = vector.broadcast %3 : vector<1x128xf32> to vector<8x128xf32>
    %5 = arith.addf %2, %4 : vector<8x128xf32>
    %cst_5 = arith.constant 5.000000e-01 : f32
    %6 = vector.broadcast %cst_5 : f32 to vector<8x128xf32>
    %7 = arith.mulf %6, %5 : vector<8x128xf32>
    %cst_6 = arith.constant 0.707106769 : f32
    %8 = vector.broadcast %cst_6 : f32 to vector<8x128xf32>
    %9 = arith.mulf %5, %8 : vector<8x128xf32>
    %10 = math.erf %9 : vector<8x128xf32>
    %cst_7 = arith.constant 1.000000e+00 : f32
    %11 = vector.broadcast %cst_7 : f32 to vector<8x128xf32>
    %12 = arith.addf %11, %10 : vector<8x128xf32>
    %13 = arith.mulf %7, %12 : vector<8x128xf32>
    %c0_8 = arith.constant 0 : index
    %c0_9 = arith.constant 0 : index
    %14 = vector.load %arg4[%c0_8, %c0_9] : memref<128x32xf32, #tpu.memory_space<vmem>>, vector<128x32xf32>
    %cst_10 = arith.constant dense<0.000000e+00> : vector<8x32xf32>
    %15 = tpu.matmul %13, %14, %cst_10 {dimension_numbers = #tpu.dot_dimension_numbers<[1], [0], [0], [1], [0, 0, 1, 1], [], []>, precision = #tpu.contract_precision<fp32>} : vector<8x128xf32>, vector<128x32xf32>, vector<8x32xf32> -> vector<8x32xf32>
    %c0_11 = arith.constant 0 : index
    %c0_12 = arith.constant 0 : index
    %16 = vector.load %arg5[%c0_11, %c0_12] : memref<1x32xf32, #tpu.memory_space<vmem>>, vector<1x32xf32>
    %17 = vector.broadcast %16 : vector<1x32xf32> to vector<8x32xf32>
    %18 = arith.addf %15, %17 : vector<8x32xf32>
    %c0_13 = arith.constant 0 : index
    %c0_14 = arith.constant 0 : index
    %19 = vector.load %arg6[%c0_13, %c0_14] : memref<8x32xf32, #tpu.memory_space<vmem>>, vector<8x32xf32>
    tpu.vector_store %arg6[%c0_13, %c0_14], %18 {strides = array<i32>} : memref<8x32xf32, #tpu.memory_space<vmem>>, vector<8x32xf32>,
    return
  }
  func.func @transform_0(%arg0: i32) -> (i32, i32) {
    %c0_i32 = arith.constant 0 : i32
    %c0_i32_0 = arith.constant 0 : i32
    return %arg0, %c0_i32 : i32, i32
  }
  func.func @transform_1(%arg0: i32) -> (i32, i32) {
    %c0_i32 = arith.constant 0 : i32
    %c0_i32_0 = arith.constant 0 : i32
    %c0_i32_1 = arith.constant 0 : i32
    return %c0_i32, %c0_i32_0 : i32, i32
  }
  func.func @transform_2(%arg0: i32) -> (i32, i32) {
    %c0_i32 = arith.constant 0 : i32
    %c0_i32_0 = arith.constant 0 : i32
    %c0_i32_1 = arith.constant 0 : i32
    return %c0_i32, %c0_i32_0 : i32, i32
  }
  func.func @transform_3(%arg0: i32) -> (i32, i32) {
    %c0_i32 = arith.constant 0 : i32
    %c0_i32_0 = arith.constant 0 : i32
    %c0_i32_1 = arith.constant 0 : i32
    return %c0_i32, %c0_i32_0 : i32, i32
  }
  func.func @transform_4(%arg0: i32) -> (i32, i32) {
    %c0_i32 = arith.constant 0 : i32
    %c0_i32_0 = arith.constant 0 : i32
    %c0_i32_1 = arith.constant 0 : i32
    return %c0_i32, %c0_i32_0 : i32, i32
  }
  func.func @transform_5(%arg0: i32) -> (i32, i32) {
    %c0_i32 = arith.constant 0 : i32
    %c0_i32_0 = arith.constant 0 : i32
    return %arg0, %c0_i32 : i32, i32
  }
}

</mosaic_0001>

<bundles_post_ra>
// kernel: tpu_custom_call.1
= control target key start
LH: loop header
LB: loop body
LE: loop exit
PB: predicated region body
PF: predicated region fallthrough
CT: control target
= control target key end

     0   :  { %10 = vsyncpa [#allocation3], 0  ;;  %s2611_s0 = inlined_call_operand.vmem [shape: f32[16,32], index: 0, kind: input, shape index: {}]   ;;  %s2612_s1 = inlined_call_operand.vmem [shape: f32[32,128], index: 1, kind: input, shape index: {}]   ;;  %s2613_s2 = inlined_call_operand.vmem [shape: f32[1,128], index: 2, kind: input, shape index: {}]   ;;  %s2614_s3 = inlined_call_operand.vmem [shape: f32[128,32], index: 3, kind: input, shape index: {}]   ;;  %s2615_s4 = inlined_call_operand.vmem [shape: f32[1,32], index: 4, kind: input, shape index: {}]   ;;  %s2616_s5 = inlined_call_operand.hbm [shape: f32[16,32], index: 5, kind: output, shape index: {}]  }
   0x1   :  { %12 = vsyncpa [#allocation3 + $0x1], 0  ;;  %s2022_s18 = smov 0   ;;  %s2024_s19 = smov 0  }
   0x2   :  { %s2026_s20 = smov 0   ;;  %s2028_s21 = smov 0  }
   0x3 LB: > { %s2043_s22 = sadd.s32 4294967295, %s1987_s21   ;;  %s1464_s23 = sadd.s32 4294967294, %s1987_s21   ;;  %s1987_s21 = sphi %s2028_s21, %s2636_s21   ;;  %s1983_s20 = sphi %s2026_s20, %s2635_s20   ;;  %s1979_s19 = sphi %s2024_s19, %s2634_s19   ;;  %s1975_s18 = sphi %s2022_s18, %s2633_s18  }
   0x4   : > { %s2047_s24 = sadd.s32 1, %s1987_s21   ;;  %s135_s25 = sadd.s32 1, %s1983_s20 }
   0x5   : > { %s132_s26 = ssub.s32 %s1987_s21, %s2047_s24  ;;  %p145_p0 = scmp.ne.s32.totalorder %s1983_s20, %s1979_s19 }
   0x6   : > { %p133_p1 = scmp.eq.s32.totalorder %s132_s26, 0  ;;  %p146_p2 = scmp.eq.s32.totalorder %s2043_s22, 1 }
   0x7   : > { %p151_p3 = scmp.ne.s32.totalorder %s1979_s19, %s1975_s18  ;;  %p152_p4 = scmp.eq.s32.totalorder %s1464_s23, 1 }
   0x8   : > { %s2058_s27 = scalar_select %p133_p1, %s1983_s20, %s135_s25  }
   0x9   : > { %p2060_p5 = por %p146_p2, %p145_p0  ;;  %p2064_p6 = por %p152_p4, %p151_p3 }
   0xa   : > { %p1467_p7 = scmp.ge.s32.totalorder %s1987_s21, 1  ;;  %p189_p8 = scmp.lt.s32.totalorder %s1987_s21, 3 }
   0xc   : > { %p190_p9 = pnand %p1467_p7, %p189_p8 }
   0xd   : > { %p216_p10 = scmp.lt.s32.totalorder (!%p190_p9), %s2043_s22, 1  ;;  %s213_s6 = sand.u32 (!%p190_p9), 1, %s1979_s19  }
   0xe   : > { %193 = sbr.rel (%p190_p9) target bundleno = 557 (0x22d), region = 40  ;;  %s1468_s7 = sshll.u32 (!%p190_p9), %s213_s6, 3 }
   0xf   : > { %s1473_s8 = sshll.u32 (!%p190_p9), %s2043_s22, 7  ;;  %s215_s9 = scalar_lea.vmem (!%p190_p9), [#allocation2], %s1468_s7 }
  0x10   : > { %s1405_s10 = sshll.u32 (!%p190_p9), %s215_s9, 4  ;;  %s1991_s16 = smov (!%p190_p9), [#allocation2]   ;;  %s1406_s10 = int_to_ptr.vmem [resolvable:$true] %s1405_s10 }
  0x11   : > { %s1927_s15 = scalar_lea.vmem (!%p190_p9), %s1406_s10, 128 }
  0x12   : > { %p1928_p11 = scmp.ne.s32.totalorder (!%p190_p9), %s1406_s10, %s1927_s15 }
  0x13   : > { %v224_v0 = vld [vmem:[%s2612_s1 + $0x18] sm:$0xff]  ;;  %v223_v1 = vld [vmem:[%s2612_s1 + $0x10] sm:$0xff]  ;;  %v222_v2 = vld [vmem:[%s2612_s1 + $0x8] sm:$0xff]  ;;  %v1989_v3 = vmov 0.0   ;;  %vm1990_vm0 = vmmov 0   ;;  %s217_s13 = scalar_select %p216_p10, %s2043_s22, 1 }
  0x14   : > { %1608 = vmatprep.subr.mxu0 %v1989_v3  ;;  %v2081_v4 = vand.u32 4294901760, %v224_v0  ;;  %1619 = vmatprep.subr.mxu1 %v1989_v3  ;;  %v2084_v5 = vand.u32 4294901760, %v223_v1  ;;  %v2086_v6 = vand.u32 4294901760, %v222_v2  ;;  %v221_v7 = vld [vmem:[%s2612_s1] sm:$0xff]  ;;  %vm232_vm1 = vcmask 261120   ;;  %v741_v32 = vld [vmem:[%s2614_s3 + $0x78] sm:$0xff]  ;;  %p1929_p12 = pnand %p1928_p11, %p2060_p5 }
  0x15   : > { %v2091_v8 = vand.u32 4294901760, %v221_v7  ;;  %1616 = vmatprep.mubr.msk.f32.mxu0 %vm1990_vm0, %v1989_v3  ;;  %1627 = vmatprep.mubr.msk.f32.mxu1 %vm1990_vm0, %v1989_v3  ;;  %s1469_s14 = sshll.u32 %s217_s13, 3  ;;  %v2172_v33 = vand.u32 4294901760, %v741_v32  ;;  %v740_v34 = vld [vmem:[%s2614_s3 + $0x70] sm:$0xff]  ;;  %v739_v37 = vld [vmem:[%s2614_s3 + $0x68] sm:$0xff]  ;;  %v738_v41 = vld [vmem:[%s2614_s3 + $0x60] sm:$0xff]  ;;  %s1403_s13 = scalar_lea.hbm %s2616_s5, %s1473_s8 }
  0x16   : > { %1609 = vmatpush3.msra.mxu0 %v2081_v4  ;;  %v341_v9 = vsub.f32 %v224_v0, %v2081_v4  ;;  %v2101_v10 = vsub.f32 %v223_v1, %v2084_v5  ;;  %v2104_v11 = vsub.f32 %v222_v2, %v2086_v6  ;;  %s219_s17 = scalar_lea.vmem %s2611_s0, %s1469_s14  ;;  %v2180_v36 = vand.u32 4294901760, %v740_v34  ;;  %v737_v46 = vld [vmem:[%s2614_s3 + $0x58] sm:$0xff]  ;;  %v736_v52 = vld [vmem:[%s2614_s3 + $0x50] sm:$0xff]  ;;  %v735_v58 = vld [vmem:[%s2614_s3 + $0x48] sm:$0xff]  ;;  %s1392_s14 = scalar_lea.sflag [#allocation3], %s213_s6 }
  0x17   : > { %1610 = vmatprep.subr.mxu0 %v1989_v3  ;;  %v2108_v12 = vsub.f32 %v221_v7, %v2091_v8  ;;  %v220_v17 = vld [vmem:[%s219_s17] sm:$0xff]  ;;  %v2178_v35 = vsub.f32 %v741_v32, %v2172_v33  ;;  %v2191_v40 = vand.u32 4294901760, %v739_v37  ;;  %v2205_v45 = vand.u32 4294901760, %v738_v41  ;;  %v733_v7 = vld [vmem:[%s2614_s3 + $0x38] sm:$0xff]  ;;  %p1930_p13 = pneg %p1929_p12  ;;  %s1931_s22 = sshll.u32 %s1991_s16, 4  ;;  %s1932_s22 = int_to_ptr.vmem [resolvable:$false] %s1931_s22 }
  0x18   : > { %v342_v13 = vand.u32 4294901760, %v341_v9  ;;  %1611 = vmatpush3.msra.mxu0 %v2084_v5  ;;  %v349_v14 = vand.u32 4294901760, %v2101_v10  ;;  %v356_v15 = vand.u32 4294901760, %v2104_v11  ;;  %v234_v21 = vsel %vm232_vm1, %v220_v17, 0  ;;  %v734_v0 = vld [vmem:[%s2614_s3 + $0x40] sm:$0xff]  ;;  %s1933_s17 = scalar_lea.vmem %s1932_s22, 256  ;;  %p1934_p0 = scmp.lt.s32.totalorder %s1406_s10, %s1932_s22 }
  0x19   : > { %1612 = vmatprep.subr.mxu0 %v1989_v3  ;;  %v363_v16 = vand.u32 4294901760, %v2108_v12  ;;  %v305_v22 = vand.u32 4294901760, %v234_v21  ;;  %v843_v38 = vand.u32 4294901760, %v2178_v35  ;;  %v2189_v39 = vsub.f32 %v740_v34, %v2180_v36  ;;  %p1935_p1 = scmp.lt.s32.totalorder %s1933_s17, %s1927_s15 }
  0x1a   : > { %v343_v18 = vsub.f32 %v341_v9, %v342_v13  ;;  %v350_v19 = vsub.f32 %v2101_v10, %v349_v14  ;;  %1613 = vmatpush3.msra.mxu0 %v2086_v6  ;;  %v357_v20 = vsub.f32 %v2104_v11, %v356_v15  ;;  %v2203_v44 = vsub.f32 %v739_v37, %v2191_v40 }
  0x1b   : > { %1614 = vmatprep.subr.mxu0 %v1989_v3  ;;  %v364_v25 = vsub.f32 %v2108_v12, %v363_v16  ;;  %v306_v26 = vsub.f32 %v234_v21, %v305_v22  ;;  %v844_v42 = vsub.f32 %v2178_v35, %v843_v38  ;;  %v850_v43 = vand.u32 4294901760, %v2189_v39  ;;  %p1936_p2 = por %p1935_p1, %p1934_p0 }
  0x1c   : > { %v344_v23 = vand.u32 4294901760, %v343_v18  ;;  %v351_v24 = vand.u32 4294901760, %v350_v19  ;;  %1615 = vmatpush3.msra.mxu0 %v2091_v8  ;;  %v358_v27 = vand.u32 4294901760, %v357_v20  ;;  %v857_v49 = vand.u32 4294901760, %v2203_v44  ;;  %v731_v19 = vld [vmem:[%s2614_s3 + $0x28] sm:$0xff] }
  0x1d   : > { %1630 = vmatprep.subr.mxu0 %v1989_v3  ;;  %v307_v28 = vand.u32 4294901760, %v306_v26  ;;  %v365_v29 = vand.u32 4294901760, %v364_v25  ;;  %v845_v47 = vand.u32 4294901760, %v844_v42  ;;  %v851_v48 = vsub.f32 %v2189_v39, %v850_v43  ;;  %v730_v25 = vld [vmem:[%s2614_s3 + $0x20] sm:$0xff]  ;;  %p1937_p3 = pnand %p1936_p2, %p1930_p13 }
  0x1e   : > { %1620 = vmatpush3.msra.mxu1 %v344_v23  ;;  %v2217_v50 = vsub.f32 %v738_v41, %v2205_v45  ;;  %v2220_v51 = vand.u32 4294901760, %v737_v46  ;;  %v858_v54 = vsub.f32 %v2203_v44, %v857_v49  ;;  %v2230_v56 = vand.u32 4294901760, %v736_v52 }
  0x1f   : > { %1621 = vmatprep.subr.mxu1 %v1989_v3  ;;  %v308_v30 = vsub.f32 %v306_v26, %v307_v28  ;;  %v852_v53 = vand.u32 4294901760, %v851_v48  ;;  %v2246_v62 = vand.u32 4294901760, %v735_v58  ;;  %v2304_v23 = vand.u32 4294901760, %v731_v19 }
  0x20   : > { %1622 = vmatpush3.msra.mxu1 %v351_v24  ;;  %v864_v55 = vand.u32 4294901760, %v2217_v50  ;;  %v2234_v57 = vsub.f32 %v737_v46, %v2220_v51  ;;  %v859_v59 = vand.u32 4294901760, %v858_v54  ;;  %v2244_v61 = vsub.f32 %v736_v52, %v2230_v56  ;;  %v728_v46 = vld [vmem:[%s2614_s3 + $0x10] sm:$0xff] }
  0x21   : > { %1623 = vmatprep.subr.mxu1 %v1989_v3  ;;  %v309_v31 = vand.u32 4294901760, %v308_v30 }
  0x22   : > { %1624 = vmatpush3.msra.mxu1 %v358_v27  ;;  %v865_v60 = vsub.f32 %v2217_v50, %v864_v55  ;;  %v871_v63 = vand.u32 4294901760, %v2234_v57  ;;  %v878_v2 = vand.u32 4294901760, %v2244_v61 }
  0x23   : > { %1625 = vmatprep.subr.mxu1 %v1989_v3  ;;  %1617 = vmatmul.mubr.f32.vlgmr.msra.gmra.mxu0 %v309_v31  ;;  %v729_v31 = vld [vmem:[%s2614_s3 + $0x18] sm:$0xff] }
  0x24   : > { %1626 = vmatpush3.msra.mxu1 %v365_v29  ;;  %1631 = vmatpush3.msra.mxu0 %v341_v9  ;;  %v866_v1 = vand.u32 4294901760, %v865_v60  ;;  %v2321_v29 = vand.u32 4294901760, %v730_v25  ;;  %v2334_v41 = vand.u32 4294901760, %v729_v31 }
  0x25   : > { %1628 = vmatmul.mubr.f32.vlgmr.msra.gmra.mxu1 %v305_v22  ;;  %1641 = vmatprep.subr.mxu1 %v1989_v3 }
  0x26   : > { %1632 = vmatprep.subr.mxu0 %v1989_v3  ;;  %1642 = vmatpush3.msra.mxu1 %v2081_v4  ;;  %v2332_v37 = vsub.f32 %v730_v25, %v2321_v29  ;;  %v2350_v52 = vsub.f32 %v729_v31, %v2334_v41 }
  0x27   : > { %1633 = vmatpush3.msra.mxu0 %v2101_v10  ;;  %1643 = vmatprep.subr.mxu1 %v1989_v3 }
  0x28   : > { %1634 = vmatprep.subr.mxu0 %v1989_v3  ;;  %1644 = vmatpush3.msra.mxu1 %v2084_v5  ;;  %v2621_v48 = vand.u32 4294901760, %v2332_v37 }
  0x29   : > { %1635 = vmatpush3.msra.mxu0 %v2104_v11  ;;  %1645 = vmatprep.subr.mxu1 %v1989_v3  ;;  %v2277_v11 = vand.u32 4294901760, %v733_v7 }
  0x2a   : > { %1636 = vmatprep.subr.mxu0 %v1989_v3  ;;  %1646 = vmatpush3.msra.mxu1 %v2086_v6  ;;  %v921_v60 = vsub.f32 %v2332_v37, %v2621_v48 }
  0x2b   : > { %1637 = vmatpush3.msra.mxu0 %v2108_v12  ;;  %1638 = vmatprep.mubr.msk.f32.mxu0 %vm1990_vm0, %v1989_v3  ;;  %v2290_v17 = vsub.f32 %v733_v7, %v2277_v11  ;;  %v726_v7 = vld [vmem:[%s2614_s3] sm:$0xff] }
  0x2c   : > { %1647 = vmatprep.subr.mxu1 %v1989_v3  ;;  %1639 = vmatmul.mubr.f32.vlgmr.msra.gmra.mxu0 %v306_v26 }
  0x2d   : > { %1648 = vmatpush3.msra.mxu1 %v2091_v8  ;;  %1649 = vmatprep.mubr.msk.f32.mxu1 %vm1990_vm0, %v1989_v3 }
  0x2e   : > { %1652 = vmatprep.subr.mxu0 %v1989_v3  ;;  %1650 = vmatmul.mubr.f32.vlgmr.msra.gmra.mxu1 %v307_v28  ;;  %v2319_v28 = vsub.f32 %v731_v19, %v2304_v23 }
  0x2f   : > { %1653 = vmatpush3.msra.mxu0 %v342_v13  ;;  %1663 = vmatprep.subr.mxu1 %v1989_v3  ;;  %v732_v13 = vld [vmem:[%s2614_s3 + $0x30] sm:$0xff] }
  0x30   : > { %1654 = vmatprep.subr.mxu0 %v1989_v3  ;;  %1664 = vmatpush3.msra.mxu1 %v2081_v4  ;;  %v2257_v4 = vsub.f32 %v735_v58, %v2246_v62  ;;  %v2293_v18 = vand.u32 4294901760, %v732_v13  ;;  %v2622_v34 = vand.u32 4294901760, %v2319_v28  ;;  %v727_v58 = vld [vmem:[%s2614_s3 + $0x8] sm:$0xff] }
  0x31   : > { %1655 = vmatpush3.msra.mxu0 %v349_v14  ;;  %1665 = vmatprep.subr.mxu1 %v1989_v3 }
  0x32   : > { %1656 = vmatprep.subr.mxu0 %v1989_v3  ;;  %1666 = vmatpush3.msra.mxu1 %v2084_v5  ;;  %v2259_v5 = vand.u32 4294901760, %v734_v0  ;;  %v885_v9 = vand.u32 4294901760, %v2257_v4  ;;  %v2308_v24 = vsub.f32 %v732_v13, %v2293_v18 }
  0x33   : > { %1657 = vmatpush3.msra.mxu0 %v356_v15  ;;  %1667 = vmatprep.subr.mxu1 %v1989_v3 }
  0x34   : > { %1658 = vmatprep.subr.mxu0 %v1989_v3  ;;  %1668 = vmatpush3.msra.mxu1 %v2086_v6  ;;  %v872_v6 = vsub.f32 %v2234_v57, %v871_v63  ;;  %v2275_v10 = vsub.f32 %v734_v0, %v2259_v5  ;;  %v886_v15 = vsub.f32 %v2257_v4, %v885_v9  ;;  %v2623_v30 = vand.u32 4294901760, %v2308_v24 }
  0x35   : > { %1659 = vmatpush3.msra.mxu0 %v363_v16  ;;  %1660 = vmatprep.mubr.msk.f32.mxu0 %vm1990_vm0, %v1989_v3  ;;  %v2620_v0 = vand.u32 4294901760, %v2350_v52 }
  0x36   : > { %1669 = vmatprep.subr.mxu1 %v1989_v3  ;;  %1661 = vmatmul.mubr.f32.vlgmr.msra.gmra.mxu0 %v305_v22  ;;  %v873_v12 = vand.u32 4294901760, %v872_v6  ;;  %v892_v16 = vand.u32 4294901760, %v2275_v10  ;;  %v887_v20 = vand.u32 4294901760, %v886_v15  ;;  %v907_v42 = vsub.f32 %v2308_v24, %v2623_v30 }
  0x37   : > { %1670 = vmatpush3.msra.mxu1 %v2091_v8  ;;  %1671 = vmatprep.mubr.msk.f32.mxu1 %vm1990_vm0, %v1989_v3  ;;  %v879_v8 = vsub.f32 %v2244_v61, %v878_v2  ;;  %v2368_v6 = vand.u32 4294901760, %v727_v58 }
  0x38   : > { %1672 = vmatmul.mubr.f32.vlgmr.msra.gmra.mxu1 %v305_v22  ;;  %1709 = vmatprep.subr.mxu1 %v1989_v3  ;;  %v893_v21 = vsub.f32 %v2275_v10, %v892_v16  ;;  %v899_v22 = vand.u32 4294901760, %v2290_v17  ;;  %v908_v54 = vand.u32 4294901760, %v907_v42 }
  0x39   : > { %1674 = vmatprep.subr.mxu0 %v1989_v3  ;;  %1741 = vmatprep.mubr.msk.f32.mxu1 %vm1990_vm0, %v1989_v3  ;;  %v880_v14 = vand.u32 4294901760, %v879_v8  ;;  %v922_v8 = vand.u32 4294901760, %v921_v60  ;;  %v2383_v15 = vsub.f32 %v727_v58, %v2368_v6  ;;  %v1470_v60 = vld [vmem:[%s2613_s2] ss:$0 sm:$0xff] }
  0x3a   : > { %1706 = vmatprep.mubr.msk.f32.mxu0 %vm1990_vm0, %v1989_v3  ;;  %1675 = vmatpush3.msra.mxu0 %v2172_v33  ;;  %v894_v26 = vand.u32 4294901760, %v893_v21  ;;  %v900_v27 = vsub.f32 %v2290_v17, %v899_v22 }
  0x3b   : > { %1676 = vmatprep.subr.mxu0 %v1989_v3  ;;  %1710 = vmatpush3.msra.mxu1 %v845_v47  ;;  %v914_v47 = vsub.f32 %v2319_v28, %v2622_v34  ;;  %v2618_v25 = vand.u32 4294901760, %v2383_v15 }
  0x3c   : > { %1677 = vmatpush3.msra.mxu0 %v2180_v36  ;;  %1711 = vmatprep.subr.mxu1 %v1989_v3  ;;  %v901_v32 = vand.u32 4294901760, %v900_v27 }
  0x3d   : > { %1678 = vmatprep.subr.mxu0 %v1989_v3  ;;  %1712 = vmatpush3.msra.mxu1 %v852_v53  ;;  %v2352_v53 = vand.u32 4294901760, %v728_v46  ;;  %v942_v31 = vsub.f32 %v2383_v15, %v2618_v25 }
  0x3e   : > { %1679 = vmatpush3.msra.mxu0 %v2191_v40  ;;  %1713 = vmatprep.subr.mxu1 %v1989_v3 }
  0x3f   : > { %1680 = vmatprep.subr.mxu0 %v1989_v3  ;;  %1714 = vmatpush3.msra.mxu1 %v859_v59  ;;  %v915_v59 = vand.u32 4294901760, %v914_v47  ;;  %v943_v42 = vand.u32 4294901760, %v942_v31 }
  0x40   : > { %1681 = vmatpush3.msra.mxu0 %v2205_v45  ;;  %1715 = vmatprep.subr.mxu1 %v1989_v3 }
  0x41   : > { %1682 = vmatprep.subr.mxu0 %v1989_v3  ;;  %1716 = vmatpush3.msra.mxu1 %v866_v1  ;;  %v2365_v1 = vsub.f32 %v728_v46, %v2352_v53 }
  0x42   : > { %1683 = vmatpush3.msra.mxu0 %v2220_v51  ;;  %1717 = vmatprep.subr.mxu1 %v1989_v3 }
  0x43   : > { %1684 = vmatprep.subr.mxu0 %v1989_v3  ;;  %1718 = vmatpush3.msra.mxu1 %v873_v12  ;;  %v928_v12 = vsub.f32 %v2350_v52, %v2620_v0  ;;  %v2619_v13 = vand.u32 4294901760, %v2365_v1 }
  0x44   : > { %1685 = vmatpush3.msra.mxu0 %v2230_v56  ;;  %1719 = vmatprep.subr.mxu1 %v1989_v3 }
  0x45   : > { %1686 = vmatprep.subr.mxu0 %v1989_v3  ;;  %1720 = vmatpush3.msra.mxu1 %v880_v14  ;;  %v2379_v14 = vand.u32 4294901760, %v726_v7  ;;  %v929_v19 = vand.u32 4294901760, %v928_v12 }
  0x46   : > { %1687 = vmatpush3.msra.mxu0 %v2246_v62  ;;  %1721 = vmatprep.subr.mxu1 %v1989_v3 }
  0x47   : > { %1688 = vmatprep.subr.mxu0 %v1989_v3  ;;  %1722 = vmatpush3.msra.mxu1 %v887_v20  ;;  %v935_v20 = vsub.f32 %v2365_v1, %v2619_v13  ;;  %v2391_v21 = vsub.f32 %v726_v7, %v2379_v14 }
  0x48   : > { %1689 = vmatpush3.msra.mxu0 %v2259_v5  ;;  %1723 = vmatprep.subr.mxu1 %v1989_v3 }
  0x49   : > { %1690 = vmatprep.subr.mxu0 %v1989_v3  ;;  %1724 = vmatpush3.msra.mxu1 %v894_v26  ;;  %v936_v26 = vand.u32 4294901760, %v935_v20  ;;  %v2617_v27 = vand.u32 4294901760, %v2391_v21 }
  0x4a   : > { %1691 = vmatpush3.msra.mxu0 %v2277_v11  ;;  %1725 = vmatprep.subr.mxu1 %v1989_v3 }
  0x4b   : > { %1692 = vmatprep.subr.mxu0 %v1989_v3  ;;  %1726 = vmatpush3.msra.mxu1 %v901_v32  ;;  %v949_v32 = vsub.f32 %v2391_v21, %v2617_v27 }
  0x4c   : > { %1693 = vmatpush3.msra.mxu0 %v2293_v18  ;;  %1727 = vmatprep.subr.mxu1 %v1989_v3 }
  0x4d   : > { %1694 = vmatprep.subr.mxu0 %v1989_v3  ;;  %1728 = vmatpush3.msra.mxu1 %v908_v54  ;;  %v950_v46 = vand.u32 4294901760, %v949_v32 }
  0x4e   : > { %1695 = vmatpush3.msra.mxu0 %v2304_v23  ;;  %1729 = vmatprep.subr.mxu1 %v1989_v3 }
  0x4f   : > { %1696 = vmatprep.subr.mxu0 %v1989_v3  ;;  %1730 = vmatpush3.msra.mxu1 %v915_v59 }
  0x50   : > { %1697 = vmatpush3.msra.mxu0 %v2321_v29  ;;  %1731 = vmatprep.subr.mxu1 %v1989_v3 }
  0x51   : > { %1698 = vmatprep.subr.mxu0 %v1989_v3  ;;  %1732 = vmatpush3.msra.mxu1 %v922_v8 }
  0x52   : > { %1699 = vmatpush3.msra.mxu0 %v2334_v41  ;;  %1733 = vmatprep.subr.mxu1 %v1989_v3 }
  0x53   : > { %1700 = vmatprep.subr.mxu0 %v1989_v3  ;;  %1734 = vmatpush3.msra.mxu1 %v929_v19 }
  0x54   : > { %1701 = vmatpush3.msra.mxu0 %v2352_v53  ;;  %1735 = vmatprep.subr.mxu1 %v1989_v3 }
  0x55   : > { %1702 = vmatprep.subr.mxu0 %v1989_v3  ;;  %1736 = vmatpush3.msra.mxu1 %v936_v26 }
  0x56   : > { %1703 = vmatpush3.msra.mxu0 %v2368_v6  ;;  %1737 = vmatprep.subr.mxu1 %v1989_v3 }
  0x57   : > { %1704 = vmatprep.subr.mxu0 %v1989_v3  ;;  %1738 = vmatpush3.msra.mxu1 %v943_v42 }
  0x58   : > { %1705 = vmatpush3.msra.mxu0 %v2379_v14  ;;  %1739 = vmatprep.subr.mxu1 %v1989_v3 }
  0x59   : > { %1744 = vmatprep.subr.mxu0 %v1989_v3  ;;  %1740 = vmatpush3.msra.mxu1 %v950_v46 }
  0x5a   : > { %1779 = vmatprep.subr.mxu1 %v1989_v3 }
  0xe3   : > { %v311_v47 = vpop.f32.mrf.mxu0 }
  0xe4   : > { %v312_v7 = vadd.f32 %v1470_v60, %v311_v47 }
  0xe5   : > { %v402_v54 = vpop.f32.mrf.mxu1  ;;  %v1618_v58 = vpop.f32.mrf.mxu0 }
  0xe6   : > { %v403_v20 = vadd.f32 %v402_v54, %v312_v7 }
  0xe7   : > { %v1629_v59 = vpop.f32.mrf.mxu1 }
  0xec   : > { %v482_v8 = vpop.f32.mrf.mxu0 }
  0xed   : > { %v483_v31 = vadd.f32 %v482_v8, %v403_v20 }
  0xee   : > { %v559_v12 = vpop.f32.mrf.mxu1  ;;  %v1640_v19 = vpop.f32.mrf.mxu0 }
  0xef   : > { %v560_v32 = vadd.f32 %v559_v12, %v483_v31 }
  0xf0   : > { %v1651_v26 = vpop.f32.mrf.mxu1 }
  0xf6   : > { %v642_v42 = vpop.f32.mrf.mxu0 }
  0xf7   : > { %v643_v46 = vadd.f32 %v642_v42, %v560_v32 }
  0xf8   : > { %v717_v27 = vpop.f32.mrf.mxu1  ;;  %v1662_v25 = vpop.f32.mrf.mxu0 }
  0xf9   : > { %v718_v13 = vadd.f32 %v717_v27, %v643_v46 }
  0xfa   : > { %v1673_v0 = vpop.f32.mrf.mxu1 }
  0xfb   : > { %v722_v58 = vmul.f32 0.70710677, %v718_v13  ;;  %v721_v48 = vmul.f32 0.5, %v718_v13 }
  0xfd   : > { %1925 = verf.f32 %v722_v58 }
 0x10a   : > { %v1926_v59 = vpop.eup %1925 }
 0x10b   : > { %v724_v34 = vadd.f32 1.0, %v1926_v59 }
 0x10d   : > { %v725_v30 = vmul.f32 %v724_v34, %v721_v48 }
 0x10f   : > { %v2412_v47 = vand.u32 4294901760, %v725_v30 }
 0x111   : > { %v2415_v60 = vsub.f32 %v725_v30, %v2412_v47  ;;  %1742 = vmatmul.mubr.f32.vlgmr.msra.gmra.mxu1 %v2412_v47 }
 0x112   : > { %1780 = vmatpush3.msra.mxu1 %v2172_v33  ;;  %1811 = vmatprep.mubr.msk.f32.mxu1 %vm1990_vm0, %v1989_v3 }
 0x113   : > { %1781 = vmatprep.subr.mxu1 %v1989_v3  ;;  %v832_v0 = vand.u32 4294901760, %v2415_v60 }
 0x114   : > { %1782 = vmatpush3.msra.mxu1 %v2180_v36 }
 0x115   : > { %1783 = vmatprep.subr.mxu1 %v1989_v3  ;;  %v833_v34 = vsub.f32 %v2415_v60, %v832_v0 }
 0x116   : > { %1784 = vmatpush3.msra.mxu1 %v2191_v40 }
 0x117   : > { %1785 = vmatprep.subr.mxu1 %v1989_v3  ;;  %v834_v30 = vand.u32 4294901760, %v833_v34 }
 0x118   : > { %1786 = vmatpush3.msra.mxu1 %v2205_v45 }
 0x119   : > { %1787 = vmatprep.subr.mxu1 %v1989_v3  ;;  %1707 = vmatmul.mubr.f32.vlgmr.msra.gmra.mxu0 %v834_v30 }
 0x11a   : > { %1745 = vmatpush3.msra.mxu0 %v2178_v35  ;;  %1788 = vmatpush3.msra.mxu1 %v2220_v51  ;;  %v2627_v35 = vand.u32 4294901760, %v2319_v28 }
 0x11b   : > { %1746 = vmatprep.subr.mxu0 %v1989_v3  ;;  %1789 = vmatprep.subr.mxu1 %v1989_v3 }
 0x11c   : > { %1747 = vmatpush3.msra.mxu0 %v2189_v39  ;;  %1790 = vmatpush3.msra.mxu1 %v2230_v56  ;;  %v2630_v39 = vand.u32 4294901760, %v2365_v1 }
 0x11d   : > { %1748 = vmatprep.subr.mxu0 %v1989_v3  ;;  %1791 = vmatprep.subr.mxu1 %v1989_v3 }
 0x11e   : > { %1749 = vmatpush3.msra.mxu0 %v2203_v44  ;;  %1792 = vmatpush3.msra.mxu1 %v2246_v62 }
 0x11f   : > { %1750 = vmatprep.subr.mxu0 %v1989_v3  ;;  %1793 = vmatprep.subr.mxu1 %v1989_v3 }
 0x120   : > { %1751 = vmatpush3.msra.mxu0 %v2217_v50  ;;  %1794 = vmatpush3.msra.mxu1 %v2259_v5 }
 0x121   : > { %1752 = vmatprep.subr.mxu0 %v1989_v3  ;;  %1795 = vmatprep.subr.mxu1 %v1989_v3 }
 0x122   : > { %1753 = vmatpush3.msra.mxu0 %v2234_v57  ;;  %1796 = vmatpush3.msra.mxu1 %v2277_v11 }
 0x123   : > { %1754 = vmatprep.subr.mxu0 %v1989_v3  ;;  %1797 = vmatprep.subr.mxu1 %v1989_v3 }
 0x124   : > { %1755 = vmatpush3.msra.mxu0 %v2244_v61  ;;  %1798 = vmatpush3.msra.mxu1 %v2293_v18  ;;  %v1471_v61 = vld [vmem:[%s2615_s4] ss:$0 sm:$0xff] }
 0x125   : > { %1756 = vmatprep.subr.mxu0 %v1989_v3  ;;  %1799 = vmatprep.subr.mxu1 %v1989_v3 }
 0x126   : > { %1757 = vmatpush3.msra.mxu0 %v2257_v4  ;;  %1800 = vmatpush3.msra.mxu1 %v2304_v23 }
 0x127   : > { %1758 = vmatprep.subr.mxu0 %v1989_v3  ;;  %1801 = vmatprep.subr.mxu1 %v1989_v3 }
 0x128   : > { %1759 = vmatpush3.msra.mxu0 %v2275_v10  ;;  %1802 = vmatpush3.msra.mxu1 %v2321_v29 }
 0x129   : > { %1760 = vmatprep.subr.mxu0 %v1989_v3  ;;  %1803 = vmatprep.subr.mxu1 %v1989_v3 }
 0x12a   : > { %1761 = vmatpush3.msra.mxu0 %v2290_v17  ;;  %1804 = vmatpush3.msra.mxu1 %v2334_v41 }
 0x12b   : > { %1762 = vmatprep.subr.mxu0 %v1989_v3  ;;  %1805 = vmatprep.subr.mxu1 %v1989_v3 }
 0x12c   : > { %1763 = vmatpush3.msra.mxu0 %v2308_v24  ;;  %1806 = vmatpush3.msra.mxu1 %v2352_v53 }
 0x12d   : > { %1764 = vmatprep.subr.mxu0 %v1989_v3  ;;  %1807 = vmatprep.subr.mxu1 %v1989_v3 }
 0x12e   : > { %1765 = vmatpush3.msra.mxu0 %v2319_v28  ;;  %1808 = vmatpush3.msra.mxu1 %v2368_v6 }
 0x12f   : > { %1766 = vmatprep.subr.mxu0 %v1989_v3  ;;  %1809 = vmatprep.subr.mxu1 %v1989_v3 }
 0x130   : > { %1767 = vmatpush3.msra.mxu0 %v2332_v37  ;;  %1810 = vmatpush3.msra.mxu1 %v2379_v14 }
 0x131   : > { %1768 = vmatprep.subr.mxu0 %v1989_v3  ;;  %1812 = vmatmul.mubr.f32.vlgmr.msra.gmra.mxu1 %v832_v0 }
 0x132   : > { %1849 = vmatprep.subr.mxu1 %v1989_v3  ;;  %1769 = vmatpush3.msra.mxu0 %v2350_v52 }
 0x133   : > { %1850 = vmatpush3.msra.mxu1 %v2172_v33  ;;  %1770 = vmatprep.subr.mxu0 %v1989_v3  ;;  %v2626_v33 = vand.u32 4294901760, %v2308_v24 }
 0x134   : > { %1851 = vmatprep.subr.mxu1 %v1989_v3  ;;  %1771 = vmatpush3.msra.mxu0 %v2365_v1 }
 0x135   : > { %1852 = vmatpush3.msra.mxu1 %v2180_v36  ;;  %1772 = vmatprep.subr.mxu0 %v1989_v3  ;;  %v2628_v36 = vand.u32 4294901760, %v2332_v37 }
 0x136   : > { %1853 = vmatprep.subr.mxu1 %v1989_v3  ;;  %1773 = vmatpush3.msra.mxu0 %v2383_v15 }
 0x137   : > { %1854 = vmatpush3.msra.mxu1 %v2191_v40  ;;  %1774 = vmatprep.subr.mxu0 %v1989_v3  ;;  %v2631_v40 = vand.u32 4294901760, %v2383_v15 }
 0x138   : > { %1855 = vmatprep.subr.mxu1 %v1989_v3  ;;  %1775 = vmatpush3.msra.mxu0 %v2391_v21 }
 0x139   : > { %1776 = vmatprep.mubr.msk.f32.mxu0 %vm1990_vm0, %v1989_v3  ;;  %1856 = vmatpush3.msra.mxu1 %v2205_v45 }
 0x13a   : > { %1777 = vmatmul.mubr.f32.vlgmr.msra.gmra.mxu0 %v2415_v60  ;;  %1814 = vmatprep.subr.mxu0 %v1989_v3 }
 0x13b   : > { %1857 = vmatprep.subr.mxu1 %v1989_v3  ;;  %1815 = vmatpush3.msra.mxu0 %v843_v38  ;;  %v2629_v38 = vand.u32 4294901760, %v2350_v52 }
 0x13c   : > { %1858 = vmatpush3.msra.mxu1 %v2220_v51  ;;  %1816 = vmatprep.subr.mxu0 %v1989_v3 }
 0x13d   : > { %1859 = vmatprep.subr.mxu1 %v1989_v3  ;;  %1817 = vmatpush3.msra.mxu0 %v850_v43  ;;  %v2632_v43 = vand.u32 4294901760, %v2391_v21 }
 0x13e   : > { %1860 = vmatpush3.msra.mxu1 %v2230_v56  ;;  %1818 = vmatprep.subr.mxu0 %v1989_v3 }
 0x13f   : > { %1861 = vmatprep.subr.mxu1 %v1989_v3  ;;  %1819 = vmatpush3.msra.mxu0 %v857_v49 }
 0x140   : > { %1862 = vmatpush3.msra.mxu1 %v2246_v62  ;;  %1820 = vmatprep.subr.mxu0 %v1989_v3 }
 0x141   : > { %1863 = vmatprep.subr.mxu1 %v1989_v3  ;;  %1821 = vmatpush3.msra.mxu0 %v864_v55 }
 0x142   : > { %1864 = vmatpush3.msra.mxu1 %v2259_v5  ;;  %1822 = vmatprep.subr.mxu0 %v1989_v3 }
 0x143   : > { %1865 = vmatprep.subr.mxu1 %v1989_v3  ;;  %1823 = vmatpush3.msra.mxu0 %v871_v63 }
 0x144   : > { %1866 = vmatpush3.msra.mxu1 %v2277_v11  ;;  %1824 = vmatprep.subr.mxu0 %v1989_v3 }
 0x145   : > { %1867 = vmatprep.subr.mxu1 %v1989_v3  ;;  %1825 = vmatpush3.msra.mxu0 %v878_v2 }
 0x146   : > { %1868 = vmatpush3.msra.mxu1 %v2293_v18  ;;  %1826 = vmatprep.subr.mxu0 %v1989_v3 }
 0x147   : > { %1869 = vmatprep.subr.mxu1 %v1989_v3  ;;  %1827 = vmatpush3.msra.mxu0 %v885_v9 }
 0x148   : > { %1870 = vmatpush3.msra.mxu1 %v2304_v23  ;;  %1828 = vmatprep.subr.mxu0 %v1989_v3 }
 0x149   : > { %1871 = vmatprep.subr.mxu1 %v1989_v3  ;;  %1829 = vmatpush3.msra.mxu0 %v892_v16 }
 0x14a   : > { %1872 = vmatpush3.msra.mxu1 %v2321_v29  ;;  %1830 = vmatprep.subr.mxu0 %v1989_v3 }
 0x14b   : > { %1873 = vmatprep.subr.mxu1 %v1989_v3  ;;  %1831 = vmatpush3.msra.mxu0 %v899_v22 }
 0x14c   : > { %1874 = vmatpush3.msra.mxu1 %v2334_v41  ;;  %1832 = vmatprep.subr.mxu0 %v1989_v3 }
 0x14d   : > { %1875 = vmatprep.subr.mxu1 %v1989_v3  ;;  %1833 = vmatpush3.msra.mxu0 %v2626_v33 }
 0x14e   : > { %1876 = vmatpush3.msra.mxu1 %v2352_v53  ;;  %1834 = vmatprep.subr.mxu0 %v1989_v3 }
 0x14f   : > { %1877 = vmatprep.subr.mxu1 %v1989_v3  ;;  %1835 = vmatpush3.msra.mxu0 %v2627_v35 }
 0x150   : > { %1878 = vmatpush3.msra.mxu1 %v2368_v6  ;;  %1836 = vmatprep.subr.mxu0 %v1989_v3 }
 0x151   : > { %1879 = vmatprep.subr.mxu1 %v1989_v3  ;;  %1837 = vmatpush3.msra.mxu0 %v2628_v36 }
 0x152   : > { %1880 = vmatpush3.msra.mxu1 %v2379_v14  ;;  %1881 = vmatprep.mubr.msk.f32.mxu1 %vm1990_vm0, %v1989_v3 }
 0x153   : > { %1838 = vmatprep.subr.mxu0 %v1989_v3  ;;  %1882 = vmatmul.mubr.f32.vlgmr.msra.gmra.mxu1 %v2412_v47 }
 0x154   : > { %1839 = vmatpush3.msra.mxu0 %v2629_v38  ;;  %1846 = vmatprep.mubr.msk.f32.mxu0 %vm1990_vm0, %v1989_v3 }
 0x155   : > { %1840 = vmatprep.subr.mxu0 %v1989_v3 }
 0x156   : > { %1841 = vmatpush3.msra.mxu0 %v2630_v39 }
 0x157   : > { %1842 = vmatprep.subr.mxu0 %v1989_v3 }
 0x158   : > { %1843 = vmatpush3.msra.mxu0 %v2631_v40 }
 0x159   : > { %1844 = vmatprep.subr.mxu0 %v1989_v3 }
 0x15a   : > { %1845 = vmatpush3.msra.mxu0 %v2632_v43 }
 0x15b   : > { %1847 = vmatmul.mubr.f32.vlgmr.msra.gmra.mxu0 %v2412_v47 }
 0x1d1   : > { %v987_v44 = vpop.f32.mrf.mxu1 }
 0x1d3   : > { %v1743_v45 = vpop.f32.mrf.mxu1 }
 0x1d9   : > { %v836_v49 = vpop.f32.mrf.mxu0 }
 0x1da   : > { %v837_v62 = vadd.f32 %v1471_v61, %v836_v49 }
 0x1db   : > { %v1708_v50 = vpop.f32.mrf.mxu0 }
 0x1dc   : > { %v988_v63 = vadd.f32 %v987_v44, %v837_v62 }
 0x1f1   : > { %v1180_v51 = vpop.f32.mrf.mxu1 }
 0x1f3   : > { %v1813_v55 = vpop.f32.mrf.mxu1 }
 0x1fa   : > { %v1091_v56 = vpop.f32.mrf.mxu0 }
 0x1fb   : > { %v1092_v4 = vadd.f32 %v1091_v56, %v988_v63 }
 0x1fc   : > { %v1778_v57 = vpop.f32.mrf.mxu0 }
 0x1fd   : > { %v1181_v5 = vadd.f32 %v1180_v51, %v1092_v4 }
 0x213   : > { %v1386_v3 = vpop.f32.mrf.mxu1 }
 0x215   : > { %v1883_v2 = vpop.f32.mrf.mxu1 }
 0x21b   : > { %v1299_v9 = vpop.f32.mrf.mxu0 }
 0x21c   : > { %v1300_v10 = vadd.f32 %v1299_v9, %v1181_v5 }
 0x21d   : > { %v1848_v11 = vpop.f32.mrf.mxu0 }
 0x21e   : > { %v1387_v16 = vadd.f32 %v1386_v3, %v1300_v10 }
 0x220   : > { %1390 = vst.msk [vmem:[%s215_s9] sm:$0xff] %vm232_vm1, %v1387_v16 }
 0x221   : > { %1940 = shalt.err (!%p1937_p3)
}
 0x222   : > { %s1941_s23 = scalar_lea.hbm %s1403_s13, 128  ;;  %s1945_s30 = scalar_lea.hbm %s2616_s5, 256 }
 0x223   : > { %p1942_p4 = scmp.ne.s32.totalorder %s1403_s13, %s1941_s23  ;;  %p1946_p9 = scmp.lt.s32.totalorder %s1403_s13, %s2616_s5 }
 0x224   : > { %p1947_p10 = scmp.lt.s32.totalorder %s1945_s30, %s1941_s23 }
 0x225   : > { %p1943_p7 = pnand %p1942_p4, %p2060_p5 }
 0x226   : > { %p1948_p11 = por %p1947_p10, %p1946_p9 }
 0x227   : > { %p1944_p8 = pneg %p1943_p7 }
 0x229   : > { %p1949_p12 = pnand %p1948_p11, %p1944_p8 }
 0x22b   : > { %1952 = shalt.err (!%p1949_p12)
}
 0x22c   : > { %1884 = dma.vmem_to_hbm [thread:$0]  (%p2060_p5), %s1406_s10, 128, %s1403_s13, %s1392_s14  }
 0x22d PF: > { %p1890_p13 = scmp.ge.s32.totalorder %s1987_s21, 2  ;;  %s1417_s8 = sand.u32 1, %s1975_s18  }
 0x22e   : > { %s1418_s9 = scalar_lea.sflag [#allocation3], %s1417_s8 }
 0x22f   : > { %p1887_p0 = pnand %p1890_p13, %p2064_p6 }
 0x231   : > { %p1888_p1 = pneg %p1887_p0 }
 0x233   : > { %1970 = dma.done.wait (%p1888_p1), %s1418_s9, 128  }
 0x234   : > { %1972 = vsyncadd (%p1888_p1), %s1418_s9, 4294967168  ;;  %p15_p2 = scmp.ge.s32.totalorder %s2047_s24, 4   ;;  %s2633_s18 = smov %s1979_s19 }
 0x235   : > { %s2634_s19 = smov %s1983_s20  ;;  %s2635_s20 = smov %s2058_s27 }
 0x236   : > { %s2636_s21 = smov %s2047_s24  ;;  %17 = sbr.rel (!%p15_p2) target bundleno = 3 (0x3), region = 75 }
 0x23b   :  { %1423 = vsyncpa [#allocation3], 1 }
 0x23c   :  { %1425 = vsyncpa [#allocation3 + $0x1], 1 }

</bundles_post_ra>
